<compile_context>
chip_gen: v7x
topology: tpu7x:2x2x1
jax: 0.10.0
libtpu: 0.0.40
codegen_flags: <defaults>
</compile_context>

<pallas_src>
import functools

import jax
import jax.numpy as jnp
from jax.experimental import pallas as pl
from jax.experimental.pallas import tpu as pltpu

LANE = 128


def _round_up(v, m):
    return (v + m - 1) // m * m


def _fused_gnn_kernel(a_ref, x_ref, w1l_ref, w1r_ref, b1_ref, w2_ref, b2_ref,
                      o_ref, p_l_scr, p_r_scr, *, tm, o_pad):
    i = pl.program_id(0)

    @pl.when(i == 0)
    def _():
        # ---- Layer 1 for ALL rows (aggregate-first: in_channels < hidden) ----
        agg1 = jnp.dot(a_ref[...], x_ref[...], preferred_element_type=jnp.float32)
        h1 = (
            jnp.dot(agg1.astype(jnp.bfloat16), w1l_ref[...],
                    preferred_element_type=jnp.float32)
            + jnp.dot(x_ref[...], w1r_ref[...],
                      preferred_element_type=jnp.float32)
            + b1_ref[...]
        )
        h1 = jnp.maximum(h1, 0.0).astype(jnp.bfloat16)

        # ---- Layer-2 projections, fused: [P_l | P_r] = h1 @ [W2_l | W2_r] ----
        p = jnp.dot(h1, w2_ref[...], preferred_element_type=jnp.float32)
        p_l_scr[...] = p[:, :o_pad].astype(jnp.bfloat16)
        # Fold b2 in once here (hoists the broadcast-add out of the grid loop).
        p_r_scr[...] = p[:, o_pad:] + b2_ref[...]

    # ---- Layer-2 aggregation for this row tile (project-first: A @ P_l) ----
    r = pl.multiple_of(i * tm, tm)
    a_rows = a_ref[pl.ds(r, tm), :]
    out = (
        jnp.dot(a_rows, p_l_scr[...], preferred_element_type=jnp.float32)
        + p_r_scr[pl.ds(r, tm), :]
    )
    o_ref[...] = out.astype(o_ref.dtype)


def build_mean_adjacency(edge_index, num_nodes):
    """Dense row-normalized adjacency: A[i, j] = 1/deg(i) if edge j -> i exists.

    Matches PyG scatter-mean (nodes with no incoming edges aggregate to 0).
    """
    src = edge_index[0]
    dst = edge_index[1]
    a = jnp.zeros((num_nodes, num_nodes), jnp.float32)
    a = a.at[dst, src].add(1.0)
    deg = a.sum(axis=-1, keepdims=True)
    return a / jnp.maximum(deg, 1.0)


def gnn_encoder_forward(x, edge_index, params, *, row_tile=32):
    """GNNEncoder.forward: conv1 -> relu -> conv2, fused in one pallas_call."""
    assert row_tile % 8 == 0
    n, f_in = x.shape
    hidden = params["w1_l"].shape[1]
    out_ch = params["w2_l"].shape[1]

    f_pad = _round_up(f_in, LANE)
    h_pad = _round_up(hidden, LANE)
    o_pad = _round_up(out_ch, LANE)
    n_pad = _round_up(n, row_tile)

    # TODO(synk): for production graph sizes replace the dense O(N^2) adjacency with
    # a CSR neighbor gather (PrefetchScalarGridSpec offsets + manual make_async_copy).
    adj = build_mean_adjacency(edge_index, n)
    adj = jnp.pad(adj, ((0, n_pad - n), (0, n_pad - n))).astype(jnp.bfloat16)
    x_p = jnp.pad(x, ((0, n_pad - n), (0, f_pad - f_in))).astype(jnp.bfloat16)

    def pad_w(w, rows, cols):
        return jnp.pad(w, ((0, rows - w.shape[0]), (0, cols - w.shape[1])))

    w1l = pad_w(params["w1_l"], f_pad, h_pad).astype(jnp.bfloat16)
    w1r = pad_w(params["w1_r"], f_pad, h_pad).astype(jnp.bfloat16)
    b1 = jnp.pad(params["b1"], (0, h_pad - hidden)).reshape(1, h_pad).astype(jnp.float32)
    # Fused layer-2 projection weight: [W2_l | W2_r]  ->  one MXU matmul in-kernel.
    w2 = jnp.concatenate(
        [pad_w(params["w2_l"], h_pad, o_pad), pad_w(params["w2_r"], h_pad, o_pad)],
        axis=1,
    ).astype(jnp.bfloat16)
    b2 = jnp.pad(params["b2"], (0, o_pad - out_ch)).reshape(1, o_pad).astype(jnp.float32)

    tm = row_tile
    kernel = functools.partial(_fused_gnn_kernel, tm=tm, o_pad=o_pad)

    out_padded = pl.pallas_call(
        kernel,
        out_shape=jax.ShapeDtypeStruct((n_pad, o_pad), jnp.float32),
        grid_spec=pltpu.PrefetchScalarGridSpec(
            num_scalar_prefetch=0,
            grid=(n_pad // tm,),
            in_specs=[
                pl.BlockSpec((n_pad, n_pad), lambda i: (0, 0)),      # A (VMEM resident)
                pl.BlockSpec((n_pad, f_pad), lambda i: (0, 0)),      # X
                pl.BlockSpec((f_pad, h_pad), lambda i: (0, 0)),      # W1_l
                pl.BlockSpec((f_pad, h_pad), lambda i: (0, 0)),      # W1_r
                pl.BlockSpec((1, h_pad), lambda i: (0, 0)),          # b1
                pl.BlockSpec((h_pad, 2 * o_pad), lambda i: (0, 0)),  # [W2_l | W2_r]
                pl.BlockSpec((1, o_pad), lambda i: (0, 0)),          # b2
            ],
            out_specs=pl.BlockSpec((tm, o_pad), lambda i: (i, 0)),
            scratch_shapes=[
                pltpu.VMEM((n_pad, o_pad), jnp.bfloat16),  # P_l (persists across grid)
                pltpu.VMEM((n_pad, o_pad), jnp.float32),   # P_r + b2
            ],
        ),
        compiler_params=pltpu.CompilerParams(
            # Must be "arbitrary": grid step 0 fills the persistent P_l/P_r scratch
            # that later steps read (a carry dependency across the row axis).
            dimension_semantics=("arbitrary",),
            vmem_limit_bytes=32 * 1024 * 1024,
        ),
    )(adj, x_p, w1l, w1r, b1, w2, b2)

    return out_padded[:n, :out_ch]


def init_params(key, in_channels, hidden_channels, out_channels):
    """Deterministic synthetic parameters (shapes per SAGEConv: lin_l + lin_r + bias)."""
    ks = jax.random.split(key, 6)
    s1 = 1.0 / jnp.sqrt(in_channels)
    s2 = 1.0 / jnp.sqrt(hidden_channels)
    return {
        "w1_l": jax.random.uniform(ks[0], (in_channels, hidden_channels), jnp.float32, -s1, s1),
        "w1_r": jax.random.uniform(ks[1], (in_channels, hidden_channels), jnp.float32, -s1, s1),
        "b1": jax.random.uniform(ks[2], (hidden_channels,), jnp.float32, -s1, s1),
        "w2_l": jax.random.uniform(ks[3], (hidden_channels, out_channels), jnp.float32, -s2, s2),
        "w2_r": jax.random.uniform(ks[4], (hidden_channels, out_channels), jnp.float32, -s2, s2),
        "b2": jax.random.uniform(ks[5], (out_channels,), jnp.float32, -s2, s2),
    }


def reference_forward_bf16(x, edge_index, params):
    """Plain-JAX reference mirroring the kernel's bf16-operand / f32-accumulate math."""
    adj = build_mean_adjacency(edge_index, x.shape[0]).astype(jnp.bfloat16)
    x16 = x.astype(jnp.bfloat16)
    bf = lambda w: w.astype(jnp.bfloat16)
    agg1 = jnp.dot(adj, x16, preferred_element_type=jnp.float32)
    h1 = (
        jnp.dot(agg1.astype(jnp.bfloat16), bf(params["w1_l"]), preferred_element_type=jnp.float32)
        + jnp.dot(x16, bf(params["w1_r"]), preferred_element_type=jnp.float32)
        + params["b1"]
    )
    h1 = jnp.maximum(h1, 0.0).astype(jnp.bfloat16)
    p_l = jnp.dot(h1, bf(params["w2_l"]), preferred_element_type=jnp.float32).astype(jnp.bfloat16)
    p_r = jnp.dot(h1, bf(params["w2_r"]), preferred_element_type=jnp.float32)
    return jnp.dot(adj, p_l, preferred_element_type=jnp.float32) + (p_r + params["b2"])


def reference_forward_f32(x, edge_index, params):
    adj = build_mean_adjacency(edge_index, x.shape[0])
    h1 = jnp.maximum(adj @ x @ params["w1_l"] + x @ params["w1_r"] + params["b1"], 0.0)
    return adj @ h1 @ params["w2_l"] + h1 @ params["w2_r"] + params["b2"]


if __name__ == "__main__":
    # Small synthetic graph: 64 nodes, 16 input features, hidden=32, out=16, 256 edges.
    num_nodes, in_channels, hidden_channels, out_channels, num_edges = 64, 16, 32, 16, 256

    key = jax.random.PRNGKey(0)
    k_x, k_e, k_p = jax.random.split(key, 3)

    x = jax.random.normal(k_x, (num_nodes, in_channels), jnp.float32)
    edge_index = jax.random.randint(k_e, (2, num_edges), 0, num_nodes, jnp.int32)
    params = init_params(k_p, in_channels, hidden_channels, out_channels)

    out = gnn_encoder_forward(x, edge_index, params, row_tile=32)
    jax.block_until_ready(out)

    assert out.shape == (num_nodes, out_channels)
    ref16 = reference_forward_bf16(x, edge_index, params)
    assert jnp.allclose(out, ref16, atol=1e-3, rtol=1e-3), float(jnp.max(jnp.abs(out - ref16)))
    ref32 = reference_forward_f32(x, edge_index, params)
    assert jnp.allclose(out, ref32, atol=1e-1, rtol=1e-1)

    print("KERNEL_OK")
</pallas_src>

<mosaic_0001>
module attributes {stable_mosaic.version = 11 : i64} {
  func.func @_fused_gnn_kernel(%arg0: i32, %arg1: memref<64x64xbf16, #tpu.memory_space<vmem>>, %arg2: memref<64x128xbf16, #tpu.memory_space<vmem>>, %arg3: memref<128x128xbf16, #tpu.memory_space<vmem>>, %arg4: memref<128x128xbf16, #tpu.memory_space<vmem>>, %arg5: memref<1x128xf32, #tpu.memory_space<vmem>>, %arg6: memref<128x256xbf16, #tpu.memory_space<vmem>>, %arg7: memref<1x128xf32, #tpu.memory_space<vmem>>, %arg8: memref<32x128xf32, #tpu.memory_space<vmem>>, %arg9: memref<64x128xbf16, #tpu.memory_space<vmem>>, %arg10: memref<64x128xf32, #tpu.memory_space<vmem>>) attributes {dimension_semantics = [#tpu.dimension_semantics<arbitrary>], iteration_bounds = array<i64: 2>, scalar_prefetch = 0 : i64, scratch_operands = 2 : i64, tpu.core_type = #tpu.core_type<tc>, window_params = [{pipeline_mode = #tpu.pipeline_mode<synchronous>, transform_indices = @transform_0, window_bounds = array<i64: 64, 64>}, {pipeline_mode = #tpu.pipeline_mode<synchronous>, transform_indices = @transform_1, window_bounds = array<i64: 64, 128>}, {pipeline_mode = #tpu.pipeline_mode<synchronous>, transform_indices = @transform_2, window_bounds = array<i64: 128, 128>}, {pipeline_mode = #tpu.pipeline_mode<synchronous>, transform_indices = @transform_3, window_bounds = array<i64: 128, 128>}, {pipeline_mode = #tpu.pipeline_mode<synchronous>, transform_indices = @transform_4, window_bounds = array<i64: 1, 128>}, {pipeline_mode = #tpu.pipeline_mode<synchronous>, transform_indices = @transform_5, window_bounds = array<i64: 128, 256>}, {pipeline_mode = #tpu.pipeline_mode<synchronous>, transform_indices = @transform_6, window_bounds = array<i64: 1, 128>}, {transform_indices = @transform_7, window_bounds = array<i64: 32, 128>}]} {
    %c0_i32 = arith.constant 0 : i32
    %0 = arith.cmpi eq, %arg0, %c0_i32 : i32
    %1 = arith.extui %0 : i1 to i32
    %c0_i32_0 = arith.constant 0 : i32
    %2 = arith.cmpi ne, %1, %c0_i32_0 : i32
    scf.if %2 {
      %c0_6 = arith.constant 0 : index
      %c0_7 = arith.constant 0 : index
      %13 = vector.load %arg1[%c0_6, %c0_7] : memref<64x64xbf16, #tpu.memory_space<vmem>>, vector<64x64xbf16>
      %c0_8 = arith.constant 0 : index
      %c0_9 = arith.constant 0 : index
      %14 = vector.load %arg2[%c0_8, %c0_9] : memref<64x128xbf16, #tpu.memory_space<vmem>>, vector<64x128xbf16>
      %cst_10 = arith.constant dense<0.000000e+00> : vector<64x128xf32>
      %15 = tpu.matmul %13, %14, %cst_10 {dimension_numbers = #tpu.dot_dimension_numbers<[1], [0], [0], [1], [0, 0, 1, 1], [], []>} : vector<64x64xbf16>, vector<64x128xbf16>, vector<64x128xf32> -> vector<64x128xf32>
      %16 = arith.truncf %15 : vector<64x128xf32> to vector<64x128xbf16>
      %c0_11 = arith.constant 0 : index
      %c0_12 = arith.constant 0 : index
      %17 = vector.load %arg3[%c0_11, %c0_12] : memref<128x128xbf16, #tpu.memory_space<vmem>>, vector<128x128xbf16>
      %cst_13 = arith.constant dense<0.000000e+00> : vector<64x128xf32>
      %18 = tpu.matmul %16, %17, %cst_13 {dimension_numbers = #tpu.dot_dimension_numbers<[1], [0], [0], [1], [0, 0, 1, 1], [], []>} : vector<64x128xbf16>, vector<128x128xbf16>, vector<64x128xf32> -> vector<64x128xf32>
      %c0_14 = arith.constant 0 : index
      %c0_15 = arith.constant 0 : index
      %19 = vector.load %arg2[%c0_14, %c0_15] : memref<64x128xbf16, #tpu.memory_space<vmem>>, vector<64x128xbf16>
      %c0_16 = arith.constant 0 : index
      %c0_17 = arith.constant 0 : index
      %20 = vector.load %arg4[%c0_16, %c0_17] : memref<128x128xbf16, #tpu.memory_space<vmem>>, vector<128x128xbf16>
      %cst_18 = arith.constant dense<0.000000e+00> : vector<64x128xf32>
      %21 = tpu.matmul %19, %20, %cst_18 {dimension_numbers = #tpu.dot_dimension_numbers<[1], [0], [0], [1], [0, 0, 1, 1], [], []>} : vector<64x128xbf16>, vector<128x128xbf16>, vector<64x128xf32> -> vector<64x128xf32>
      %22 = arith.addf %18, %21 : vector<64x128xf32>
      %c0_19 = arith.constant 0 : index
      %c0_20 = arith.constant 0 : index
      %23 = vector.load %arg5[%c0_19, %c0_20] : memref<1x128xf32, #tpu.memory_space<vmem>>, vector<1x128xf32>
      %24 = vector.broadcast %23 : vector<1x128xf32> to vector<64x128xf32>
      %25 = arith.addf %22, %24 : vector<64x128xf32>
      %cst_21 = arith.constant 0.000000e+00 : f32
      %26 = vector.broadcast %cst_21 : f32 to vector<64x128xf32>
      %27 = arith.maximumf %25, %26 : vector<64x128xf32>
      %28 = arith.truncf %27 : vector<64x128xf32> to vector<64x128xbf16>
      %c0_22 = arith.constant 0 : index
      %c0_23 = arith.constant 0 : index
      %29 = vector.load %arg6[%c0_22, %c0_23] : memref<128x256xbf16, #tpu.memory_space<vmem>>, vector<128x256xbf16>
      %cst_24 = arith.constant dense<0.000000e+00> : vector<64x256xf32>
      %30 = tpu.matmul %28, %29, %cst_24 {dimension_numbers = #tpu.dot_dimension_numbers<[1], [0], [0], [1], [0, 0, 1, 1], [], []>} : vector<64x128xbf16>, vector<128x256xbf16>, vector<64x256xf32> -> vector<64x256xf32>
      %31 = vector.extract_strided_slice %30 {offsets = [0, 0], sizes = [64, 128], strides = [1, 1]} : vector<64x256xf32> to vector<64x128xf32>
      %32 = arith.truncf %31 : vector<64x128xf32> to vector<64x128xbf16>
      %c0_25 = arith.constant 0 : index
      %c0_26 = arith.constant 0 : index
      %33 = vector.load %arg9[%c0_25, %c0_26] : memref<64x128xbf16, #tpu.memory_space<vmem>>, vector<64x128xbf16>
      tpu.vector_store %arg9[%c0_25, %c0_26], %32 {strides = array<i32>} : memref<64x128xbf16, #tpu.memory_space<vmem>>, vector<64x128xbf16>,
      %34 = vector.extract_strided_slice %30 {offsets = [0, 128], sizes = [64, 128], strides = [1, 1]} : vector<64x256xf32> to vector<64x128xf32>
      %c0_27 = arith.constant 0 : index
      %c0_28 = arith.constant 0 : index
      %35 = vector.load %arg7[%c0_27, %c0_28] : memref<1x128xf32, #tpu.memory_space<vmem>>, vector<1x128xf32>
      %36 = vector.broadcast %35 : vector<1x128xf32> to vector<64x128xf32>
      %37 = arith.addf %34, %36 : vector<64x128xf32>
      %c0_29 = arith.constant 0 : index
      %c0_30 = arith.constant 0 : index
      %38 = vector.load %arg10[%c0_29, %c0_30] : memref<64x128xf32, #tpu.memory_space<vmem>>, vector<64x128xf32>
      tpu.vector_store %arg10[%c0_29, %c0_30], %37 {strides = array<i32>} : memref<64x128xf32, #tpu.memory_space<vmem>>, vector<64x128xf32>,
    } else {
    }
    %c32_i32 = arith.constant 32 : i32
    %3 = arith.muli %arg0, %c32_i32 : i32
    %4 = tpu.assume_multiple %3, 32 : i32
    %5 = arith.index_cast %4 : i32 to index
    %c0 = arith.constant 0 : index
    %6 = vector.load %arg1[%5, %c0] : memref<64x64xbf16, #tpu.memory_space<vmem>>, vector<32x64xbf16>
    %c0_1 = arith.constant 0 : index
    %c0_2 = arith.constant 0 : index
    %7 = vector.load %arg9[%c0_1, %c0_2] : memref<64x128xbf16, #tpu.memory_space<vmem>>, vector<64x128xbf16>
    %cst = arith.constant dense<0.000000e+00> : vector<32x128xf32>
    %8 = tpu.matmul %6, %7, %cst {dimension_numbers = #tpu.dot_dimension_numbers<[1], [0], [0], [1], [0, 0, 1, 1], [], []>} : vector<32x64xbf16>, vector<64x128xbf16>, vector<32x128xf32> -> vector<32x128xf32>
    %9 = arith.index_cast %4 : i32 to index
    %c0_3 = arith.constant 0 : index
    %10 = vector.load %arg10[%9, %c0_3] : memref<64x128xf32, #tpu.memory_space<vmem>>, vector<32x128xf32>
    %11 = arith.addf %8, %10 : vector<32x128xf32>
    %c0_4 = arith.constant 0 : index
    %c0_5 = arith.constant 0 : index
    %12 = vector.load %arg8[%c0_4, %c0_5] : memref<32x128xf32, #tpu.memory_space<vmem>>, vector<32x128xf32>
    tpu.vector_store %arg8[%c0_4, %c0_5], %11 {strides = array<i32>} : memref<32x128xf32, #tpu.memory_space<vmem>>, vector<32x128xf32>,
    return
  }
  func.func @transform_0(%arg0: i32) -> (i32, i32) {
    %c0_i32 = arith.constant 0 : i32
    %c0_i32_0 = arith.constant 0 : i32
    %c0_i32_1 = arith.constant 0 : i32
    return %c0_i32, %c0_i32_0 : i32, i32
  }
  func.func @transform_1(%arg0: i32) -> (i32, i32) {
    %c0_i32 = arith.constant 0 : i32
    %c0_i32_0 = arith.constant 0 : i32
    %c0_i32_1 = arith.constant 0 : i32
    return %c0_i32, %c0_i32_0 : i32, i32
  }
  func.func @transform_2(%arg0: i32) -> (i32, i32) {
    %c0_i32 = arith.constant 0 : i32
    %c0_i32_0 = arith.constant 0 : i32
    %c0_i32_1 = arith.constant 0 : i32
    return %c0_i32, %c0_i32_0 : i32, i32
  }
  func.func @transform_3(%arg0: i32) -> (i32, i32) {
    %c0_i32 = arith.constant 0 : i32
    %c0_i32_0 = arith.constant 0 : i32
    %c0_i32_1 = arith.constant 0 : i32
    return %c0_i32, %c0_i32_0 : i32, i32
  }
  func.func @transform_4(%arg0: i32) -> (i32, i32) {
    %c0_i32 = arith.constant 0 : i32
    %c0_i32_0 = arith.constant 0 : i32
    %c0_i32_1 = arith.constant 0 : i32
    return %c0_i32, %c0_i32_0 : i32, i32
  }
  func.func @transform_5(%arg0: i32) -> (i32, i32) {
    %c0_i32 = arith.constant 0 : i32
    %c0_i32_0 = arith.constant 0 : i32
    %c0_i32_1 = arith.constant 0 : i32
    return %c0_i32, %c0_i32_0 : i32, i32
  }
  func.func @transform_6(%arg0: i32) -> (i32, i32) {
    %c0_i32 = arith.constant 0 : i32
    %c0_i32_0 = arith.constant 0 : i32
    %c0_i32_1 = arith.constant 0 : i32
    return %c0_i32, %c0_i32_0 : i32, i32
  }
  func.func @transform_7(%arg0: i32) -> (i32, i32) {
    %c0_i32 = arith.constant 0 : i32
    %c0_i32_0 = arith.constant 0 : i32
    return %arg0, %c0_i32 : i32, i32
  }
}

</mosaic_0001>

<bundles_post_ra>
// kernel: tpu_custom_call.1
= control target key start
LH: loop header
LB: loop body
LE: loop exit
PB: predicated region body
PF: predicated region fallthrough
CT: control target
= control target key end

     0   :  { %s2055_s0 = inlined_call_operand.hbm [shape: bf16[64,64], index: 0, kind: input, shape index: {}]   ;;  %s2056_s1 = inlined_call_operand.hbm [shape: bf16[64,128], index: 1, kind: input, shape index: {}]   ;;  %s2057_s2 = inlined_call_operand.hbm [shape: bf16[128,128], index: 2, kind: input, shape index: {}]   ;;  %s2058_s3 = inlined_call_operand.hbm [shape: bf16[128,128], index: 3, kind: input, shape index: {}]   ;;  %s2059_s4 = inlined_call_operand.vmem [shape: f32[1,128], index: 4, kind: input, shape index: {}]   ;;  %s2060_s5 = inlined_call_operand.hbm [shape: bf16[128,256], index: 5, kind: input, shape index: {}]   ;;  %s2061_s6 = inlined_call_operand.vmem [shape: f32[1,128], index: 6, kind: input, shape index: {}]   ;;  %s2062_s7 = inlined_call_operand.hbm [shape: f32[64,128], index: 7, kind: output, shape index: {}]  }
   0x1   :  { %2069 = sst [smem:[#allocation21_spill]] %s2056_s1 }
   0x2   :  { %12 = vsyncpa [#allocation5], 0 }
   0x3   :  { %13 = vsyncpa [#allocation8], 0 }
   0x4   :  { %14 = vsyncpa [#allocation11], 0 }
   0x5   :  { %15 = vsyncpa [#allocation6], 0 }
   0x6   :  { %17 = vsyncpa [#allocation6 + $0x1], 0  ;;  %s1780_s24 = smov 0   ;;  %s1782_s25 = smov 0  }
   0x7   :  { %s1784_s26 = smov 0   ;;  %s1786_s27 = smov 0  }
   0x8 LB: > { %2070 = sst [smem:[#allocation18_spill]] %s1721_s26  ;;  %s1801_s28 = sadd.s32 4294967295, %s1725_s27   ;;  %s1725_s27 = sphi %s1786_s27, %s2089_s27   ;;  %s1721_s26 = sphi %s1784_s26, %s2091_s26   ;;  %s1717_s25 = sphi %s1782_s25, %s2093_s25   ;;  %s1713_s24 = sphi %s1780_s24, %s2092_s24  }
   0x9   : > { %s1169_s29 = sadd.s32 4294967294, %s1725_s27   ;;  %s1805_s30 = sadd.s32 1, %s1725_s27  }
   0xa   : > { %2071 = sst [smem:[#allocation19_spill]] %s1805_s30  ;;  %s177_s8 = sadd.s32 1, %s1721_s26 }
   0xb   : > { %s174_s9 = ssub.s32 %s1725_s27, %s1805_s30  ;;  %p187_p0 = scmp.ne.s32.totalorder %s1721_s26, %s1717_s25 }
   0xc   : > { %p175_p1 = scmp.eq.s32.totalorder %s174_s9, 0  ;;  %p188_p2 = scmp.eq.s32.totalorder %s1801_s28, 1 }
   0xd   : > { %p193_p3 = scmp.ne.s32.totalorder %s1717_s25, %s1713_s24  ;;  %p194_p4 = scmp.eq.s32.totalorder %s1169_s29, 1 }
   0xe   : > { %s1816_s10 = scalar_select %p175_p1, %s1721_s26, %s177_s8  }
   0xf   : > { %p1818_p5 = por %p188_p2, %p187_p0  ;;  %p1822_p6 = por %p194_p4, %p193_p3 }
  0x10   : > { %2072 = sst [smem:[#allocation20_spill]] %s1816_s10  ;;  %p1170_p7 = scmp.ge.s32.totalorder %s1725_s27, 1 }
  0x11   : > { %s2073_s11 = scalar_select %p1818_p5, 1, 0 }
  0x12   : > { %s2074_s12 = scalar_select %p1822_p6, 1, 0 }
  0x13   : > { %p201_p8 = scmp.lt.s32.totalorder %s1725_s27, 3  ;;  %p2063_p10 = scmp.eq.s32.totalorder %s1801_s28, 0 }
  0x14   : > { %s1727_s14 = smov [#allocation7]   ;;  %s1728_s17 = smov [#allocation10]  }
  0x15   : > { %p1830_p11 = pnand %p1170_p7, %p201_p8  ;;  %s226_s15 = sshll.u32 %s1727_s14, 4  ;;  %s1836_s15 = int_to_ptr.vmem [resolvable:$true] %s226_s15 }
  0x16   : > { %s252_s18 = sshll.u32 %s1728_s17, 4  ;;  %s1729_s19 = smov [#allocation4]   ;;  %s1844_s18 = int_to_ptr.vmem [resolvable:$true] %s252_s18 }
  0x17   : > { %s2075_s13 = scalar_select %p1830_p11, 1, 0 }
  0x18   : > { %p1386_p12 = pneg %p1830_p11  ;;  %s1846_s20 = sshll.u32 %s1729_s19, 4  ;;  %s214_s20 = int_to_ptr.vmem [resolvable:$true] %s1846_s20 }
  0x19   : > { %s2077_s1 = sld [smem:[#allocation21_spill]] }
  0x1a   : > { %p1840_p13 = pnand %p2063_p10, %p1386_p12 }
  0x1c   : > { %p1856_p1 = pneg %p1840_p13 }
  0x1f   : > { %s1511_s23 = scalar_lea.hbm %s2077_s1, 512 }
  0x20   : > { %p1512_p0 = scmp.ne.s32.totalorder %s2077_s1, %s1511_s23  ;;  %p1518_p4 = scmp.lt.u32.totalorder %s1511_s23, %s2077_s1 }
  0x22   : > { %p1514_p2 = pnand %p1856_p1, %p1512_p0 }
  0x24   : > { %p1515_p3 = pneg %p1514_p2 }
  0x26   : > { %p1520_p7 = pnand %p1518_p4, %p1515_p3 }
  0x28   : > { %1523 = shalt.err (!%p1520_p7)
}
  0x29   : > { %s1524_s19 = scalar_lea.vmem %s1836_s15, 512  ;;  %p1532_p10 = scmp.lt.s32.totalorder %s1836_s15, %s1836_s15 }
  0x2a   : > { %p1525_p8 = scmp.ne.s32.totalorder %s1836_s15, %s1524_s19  ;;  %p1533_p6 = scmp.lt.s32.totalorder %s1524_s19, %s1524_s19 }
  0x2c   : > { %p1527_p12 = pnand %p1525_p8, %p1856_p1  ;;  %p1534_p0 = por %p1533_p6, %p1532_p10 }
  0x2e   : > { %p1528_p9 = pneg %p1527_p12 }
  0x30   : > { %p1535_p2 = pnand %p1534_p0, %p1528_p9 }
  0x32   : > { %1538 = shalt.err (!%p1535_p2)
}
  0x33   : > { %s1730_s21 = smov 64   ;;  %s1731_s22 = smov 4  }
  0x34   : > { %1392 = dma.hbm_to_vmem [thread:$0]  (!%p1840_p13), %s2077_s1, 512, %s1836_s15, [#allocation8], %s1730_s21, %s1730_s21, %s1731_s22  }
  0x35   : > { %s1539_s17 = scalar_lea.hbm %s2058_s3, 1024 }
  0x36   : > { %p1540_p6 = scmp.ne.s32.totalorder %s2058_s3, %s1539_s17  ;;  %p1546_p3 = scmp.lt.u32.totalorder %s1539_s17, %s2058_s3 }
  0x38   : > { %p1542_p9 = pnand %p1540_p6, %p1856_p1 }
  0x3a   : > { %p1543_p10 = pneg %p1542_p9 }
  0x3c   : > { %p1548_p4 = pnand %p1546_p3, %p1543_p10 }
  0x3e   : > { %1551 = shalt.err (!%p1548_p4)
}
  0x3f   : > { %s1552_s15 = scalar_lea.vmem %s1844_s18, 1024  ;;  %p1560_p0 = scmp.lt.s32.totalorder %s1844_s18, %s1844_s18 }
  0x40   : > { %p1553_p7 = scmp.ne.s32.totalorder %s1844_s18, %s1552_s15  ;;  %p1561_p2 = scmp.lt.s32.totalorder %s1552_s15, %s1552_s15 }
  0x42   : > { %p1555_p8 = pnand %p1553_p7, %p1856_p1  ;;  %p1562_p6 = por %p1561_p2, %p1560_p0 }
  0x44   : > { %p1556_p12 = pneg %p1555_p8 }
  0x46   : > { %p1563_p9 = pnand %p1562_p6, %p1556_p12 }
  0x48   : > { %1566 = shalt.err (!%p1563_p9)
}
  0x49   : > { %1398 = dma.hbm_to_vmem [thread:$0]  (!%p1840_p13), %s2058_s3, 1024, %s1844_s18, [#allocation11], %s1730_s21, %s1730_s21, %s1731_s22  }
  0x4a   : > { %s1567_s29 = scalar_lea.hbm %s2055_s0, 512 }
  0x4b   : > { %p1568_p10 = scmp.ne.s32.totalorder %s2055_s0, %s1567_s29  ;;  %p1574_p7 = scmp.lt.u32.totalorder %s1567_s29, %s2055_s0 }
  0x4d   : > { %p1570_p3 = pnand %p1568_p10, %p1856_p1 }
  0x4f   : > { %p1571_p4 = pneg %p1570_p3 }
  0x51   : > { %p1576_p8 = pnand %p1574_p7, %p1571_p4 }
  0x53   : > { %1579 = shalt.err (!%p1576_p8)
}
  0x54   : > { %s1580_s15 = scalar_lea.vmem %s214_s20, 512  ;;  %p1588_p6 = scmp.lt.s32.totalorder %s214_s20, %s214_s20 }
  0x55   : > { %p1581_p12 = scmp.ne.s32.totalorder %s214_s20, %s1580_s15  ;;  %p1589_p9 = scmp.lt.s32.totalorder %s1580_s15, %s1580_s15 }
  0x57   : > { %p1583_p0 = pnand %p1581_p12, %p1856_p1  ;;  %p1590_p5 = por %p1589_p9, %p1588_p6 }
  0x59   : > { %p1584_p2 = pneg %p1583_p0 }
  0x5b   : > { %p1591_p11 = pnand %p1590_p5, %p1584_p2 }
  0x5d   : > { %1594 = shalt.err (!%p1591_p11)
}
  0x5e   : > { %1389 = dma.hbm_to_vmem [thread:$0]  (!%p1840_p13), %s2055_s0, 512, %s214_s20, [#allocation5], %s1730_s21, %s1730_s21, %s1731_s22  }
  0x5f   : > { %s1732_s30 = smov [#allocation9]   ;;  %s1733_s23 = smov [#allocation12]  }
  0x60   : > { %s239_s10 = sshll.u32 %s1732_s30, 4  ;;  %s268_s29 = sshll.u32 %s1733_s23, 4  ;;  %s240_s10 = int_to_ptr.vmem [resolvable:$true] %s239_s10  ;;  %s269_s29 = int_to_ptr.vmem [resolvable:$true] %s268_s29 }
  0x61   : > { %s1595_s17 = scalar_lea.hbm %s2057_s2, 1024 }
  0x62   : > { %p1596_p5 = scmp.ne.s32.totalorder %s2057_s2, %s1595_s17  ;;  %p1602_p3 = scmp.lt.u32.totalorder %s1595_s17, %s2057_s2 }
  0x64   : > { %p1598_p11 = pnand %p1596_p5, %p1856_p1 }
  0x66   : > { %p1599_p10 = pneg %p1598_p11 }
  0x68   : > { %p1604_p4 = pnand %p1602_p3, %p1599_p10 }
  0x6a   : > { %1607 = shalt.err (!%p1604_p4)
}
  0x6b   : > { %s1608_s20 = scalar_lea.vmem %s240_s10, 1024  ;;  %p1616_p0 = scmp.lt.s32.totalorder %s240_s10, %s240_s10 }
  0x6c   : > { %p1609_p7 = scmp.ne.s32.totalorder %s240_s10, %s1608_s20  ;;  %p1617_p2 = scmp.lt.s32.totalorder %s1608_s20, %s1608_s20 }
  0x6e   : > { %p1611_p8 = pnand %p1609_p7, %p1856_p1  ;;  %p1618_p6 = por %p1617_p2, %p1616_p0 }
  0x70   : > { %p1612_p12 = pneg %p1611_p8 }
  0x72   : > { %p1619_p9 = pnand %p1618_p6, %p1612_p12 }
  0x74   : > { %1622 = shalt.err (!%p1619_p9)
}
  0x75   : > { %1395 = dma.hbm_to_vmem [thread:$0]  (!%p1840_p13), %s2057_s2, 1024, %s240_s10, [#allocation8], %s1730_s21, %s1730_s21, %s1731_s22  }
  0x76   : > { %s1623_s8 = scalar_lea.hbm %s2060_s5, 2048 }
  0x77   : > { %p1624_p5 = scmp.ne.s32.totalorder %s2060_s5, %s1623_s8  ;;  %p1630_p3 = scmp.lt.u32.totalorder %s1623_s8, %s2060_s5 }
  0x79   : > { %p1626_p11 = pnand %p1624_p5, %p1856_p1 }
  0x7b   : > { %p1627_p10 = pneg %p1626_p11 }
  0x7d   : > { %p1632_p4 = pnand %p1630_p3, %p1627_p10 }
  0x7f   : > { %1635 = shalt.err (!%p1632_p4)
}
  0x80   : > { %s1636_s18 = scalar_lea.vmem %s269_s29, 2048  ;;  %p1644_p0 = scmp.lt.s32.totalorder %s269_s29, %s269_s29 }
  0x81   : > { %p1637_p7 = scmp.ne.s32.totalorder %s269_s29, %s1636_s18  ;;  %p1645_p2 = scmp.lt.s32.totalorder %s1636_s18, %s1636_s18 }
  0x83   : > { %p1639_p8 = pnand %p1637_p7, %p1856_p1  ;;  %p1646_p6 = por %p1645_p2, %p1644_p0 }
  0x85   : > { %p1640_p12 = pneg %p1639_p8 }
  0x87   : > { %p1647_p9 = pnand %p1646_p6, %p1640_p12 }
  0x89   : > { %1650 = shalt.err (!%p1647_p9)
}
  0x8a   : > { %s1734_s21 = smov 128   ;;  %s1735_s22 = smov 8  }
  0x8b   : > { %1401 = dma.hbm_to_vmem [thread:$0]  (!%p1840_p13), %s2060_s5, 2048, %s269_s29, [#allocation11], %s1734_s21, %s1734_s21, %s1735_s22  }
  0x8c   : > { %p2079_p5 = scmp.ne.s32.totalorder %s2075_s13, 0 }
  0x8d   : > { %p2080_p11 = scmp.eq.s32.totalorder (!%p2079_p5), %s1801_s28, 0 }
  0x8e   : > { %287 = sbr.rel (%p2079_p5) target bundleno = 1105 (0x451), region = 48 }
  0x95   : > { %1696 = dma.done.wait (%p2080_p11), [#allocation5], 512   ;;  %p2081_p1 = pmov %p2080_p11 }
  0x97   : > { %1698 = vsyncadd (%p2081_p1), [#allocation5], 4294966784  ;;  %p2082_p10 = pmov %p2081_p1 }
  0x98   : > { %p2083_p3 = pmov %p2081_p1 }
  0x99   : > { %1700 = dma.done.wait (%p2082_p10), [#allocation8], 1536  }
  0x9a   : > { %1702 = vsyncadd (%p2083_p3), [#allocation8], 4294965760  ;;  %p2084_p4 = pmov %p2081_p1 }
  0x9b   : > { %p2085_p13 = pmov %p2081_p1 }
  0x9c   : > { %1704 = dma.done.wait (%p2084_p4), [#allocation11], 3072  }
  0x9d   : > { %1706 = vsyncadd (%p2085_p13), [#allocation11], 4294964224  ;;  %s327_s13 = sand.u32 1, %s1717_s25   ;;  %p2086_p7 = scmp.ne.s32.totalorder %s1801_s28, 0 }
  0x9e   : > { %s1182_s16 = sshll.u32 %s327_s13, 5  ;;  %v1461_v0 = vld [vmem:[#allocation7] sm:$0xff] (!%p2086_p7)   ;;  %v1462_v1 = vld [vmem:[#allocation7 + $0x8] sm:$0xff] (!%p2086_p7)   ;;  %v1463_v2 = vld [vmem:[#allocation7 + $0x10] sm:$0xff] (!%p2086_p7)   ;;  %vm396_vm0 = vcmask (!%p2086_p7), 523264   ;;  %v1736_v52 = vmov (!%p2086_p7), 0  }
  0x9f   : > { %s1984_s9 = scalar_lea.vmem [#allocation13], %s1182_s16  ;;  %335 = sbr.rel (%p2086_p7) target bundleno = 856 (0x358), region = 72  ;;  %1280 = vmatprep.subr.bf16.mxu0 (!%p2086_p7), %v1461_v0  ;;  %1312 = vmatprep.mubr.bf16.mxu1 (!%p2086_p7), %v1461_v0  ;;  %v1465_v3 = vld [vmem:[#allocation4] sm:$0xff] (!%p2086_p7)   ;;  %v1464_v4 = vld [vmem:[#allocation7 + $0x18] sm:$0xff] (!%p2086_p7)   ;;  %v1470_v6 = vld [vmem:[#allocation10 + $0x8] sm:$0xff] (!%p2086_p7)  }
  0xa0   : > { %1281 = vmatpush3.bf16.msra.mxu0 (!%p2086_p7), %v1461_v0  ;;  %1288 = vmatprep.mubr.msk.bf16.mxu0 (!%p2086_p7), %vm396_vm0, %v1465_v3  ;;  %v1469_v5 = vld [vmem:[#allocation10] sm:$0xff] (!%p2086_p7)   ;;  %v1471_v7 = vld [vmem:[#allocation10 + $0x10] sm:$0xff] (!%p2086_p7)   ;;  %v1466_v8 = vld [vmem:[#allocation4 + $0x8] sm:$0xff] (!%p2086_p7)  }
  0xa1   : > { %1282 = vmatprep.subr.bf16.mxu0 (!%p2086_p7), %v1462_v1  ;;  %1296 = vmatprep.subr.bf16.mxu1 (!%p2086_p7), %v1469_v5  ;;  %v1467_v9 = vld [vmem:[#allocation4 + $0x10] sm:$0xff] (!%p2086_p7)   ;;  %v1472_v10 = vld [vmem:[#allocation10 + $0x18] sm:$0xff] (!%p2086_p7)   ;;  %v1473_v11 = vld [vmem:[#allocation10 + $0x20] sm:$0xff] (!%p2086_p7)  }
  0xa2   : > { %1297 = vmatpush3.bf16.msra.mxu1 (!%p2086_p7), %v1469_v5  ;;  %v1468_v12 = vld [vmem:[#allocation4 + $0x18] sm:$0xff] (!%p2086_p7)   ;;  %v1474_v13 = vld [vmem:[#allocation10 + $0x28] sm:$0xff] (!%p2086_p7)   ;;  %v1475_v14 = vld [vmem:[#allocation10 + $0x30] sm:$0xff] (!%p2086_p7)  }
  0xa3   : > { %1298 = vmatprep.subr.bf16.mxu1 (!%p2086_p7), %v1470_v6  ;;  %v1476_v15 = vld [vmem:[#allocation10 + $0x38] sm:$0xff] (!%p2086_p7)   ;;  %v1477_v16 = vld [vmem:[#allocation9] sm:$0xff] (!%p2086_p7)   ;;  %v1478_v17 = vld [vmem:[#allocation9 + $0x8] sm:$0xff] (!%p2086_p7)  }
  0xa4   : > { %1283 = vmatpush3.bf16.msra.mxu0 (!%p2086_p7), %v1462_v1  ;;  %v1479_v18 = vld [vmem:[#allocation9 + $0x10] sm:$0xff] (!%p2086_p7)   ;;  %v1480_v19 = vld [vmem:[#allocation9 + $0x18] sm:$0xff] (!%p2086_p7)   ;;  %v1481_v20 = vld [vmem:[#allocation9 + $0x20] sm:$0xff] (!%p2086_p7)  }
  0xa5   : > { %1284 = vmatprep.subr.bf16.mxu0 (!%p2086_p7), %v1463_v2  ;;  %v1482_v21 = vld [vmem:[#allocation9 + $0x28] sm:$0xff] (!%p2086_p7)   ;;  %v1483_v22 = vld [vmem:[#allocation9 + $0x30] sm:$0xff] (!%p2086_p7)   ;;  %v1484_v23 = vld [vmem:[#allocation9 + $0x38] sm:$0xff] (!%p2086_p7)  }
  0xa6   : > { %1299 = vmatpush3.bf16.msra.mxu1 %v1470_v6  ;;  %v1485_v24 = vld [vmem:[#allocation12] ss:$8 sps:$4 sm:$0xff]   ;;  %v1487_v25 = vld [vmem:[#allocation12 + $0x4] ss:$8 sps:$4 sm:$0xff]   ;;  %v1490_v26 = vld [vmem:[#allocation12 + $0x14] ss:$8 sps:$4 sm:$0xff]  }
  0xa7   : > { %1300 = vmatprep.subr.bf16.mxu1 %v1471_v7  ;;  %v1488_v27 = vld [vmem:[#allocation12 + $0x10] ss:$8 sps:$4 sm:$0xff]   ;;  %v1493_v28 = vld [vmem:[#allocation12 + $0x24] ss:$8 sps:$4 sm:$0xff]   ;;  %v1491_v29 = vld [vmem:[#allocation12 + $0x20] ss:$8 sps:$4 sm:$0xff]  }
  0xa8   : > { %1285 = vmatpush3.bf16.msra.mxu0 %v1463_v2  ;;  %v1496_v30 = vld [vmem:[#allocation12 + $0x34] ss:$8 sps:$4 sm:$0xff]   ;;  %v1494_v31 = vld [vmem:[#allocation12 + $0x30] ss:$8 sps:$4 sm:$0xff]   ;;  %v1499_v32 = vld [vmem:[#allocation12 + $0x44] ss:$8 sps:$4 sm:$0xff]  }
  0xa9   : > { %1286 = vmatprep.subr.bf16.mxu0 %v1464_v4  ;;  %v1497_v33 = vld [vmem:[#allocation12 + $0x40] ss:$8 sps:$4 sm:$0xff]   ;;  %v1502_v34 = vld [vmem:[#allocation12 + $0x54] ss:$8 sps:$4 sm:$0xff]   ;;  %v1500_v35 = vld [vmem:[#allocation12 + $0x50] ss:$8 sps:$4 sm:$0xff]  }
  0xaa   : > { %1301 = vmatpush3.bf16.msra.mxu1 %v1471_v7  ;;  %v1505_v48 = vld [vmem:[#allocation12 + $0x64] ss:$8 sps:$4 sm:$0xff]   ;;  %v1503_v49 = vld [vmem:[#allocation12 + $0x60] ss:$8 sps:$4 sm:$0xff]   ;;  %v1508_v50 = vld [vmem:[#allocation12 + $0x74] ss:$8 sps:$4 sm:$0xff]  }
  0xab   : > { %1302 = vmatprep.subr.bf16.mxu1 %v1472_v10  ;;  %v1506_v51 = vld [vmem:[#allocation12 + $0x70] ss:$8 sps:$4 sm:$0xff]   ;;  %v1212_v53 = vld [vmem:[%s2059_s4] ss:$0 sm:$0xff] }
  0xac   : > { %1287 = vmatpush3.bf16.msra.mxu0 %v1464_v4 }
  0xad   : > { %859 = vmatprep.subr.bf16.mxu0 %v1487_v25 }
  0xae   : > { %1303 = vmatpush3.bf16.msra.mxu1 %v1472_v10 }
  0xaf   : > { %1289 = vmatmul.mubr.msk.bf16.vlgmr.msra.gmra.mrb[0].mxu0 %vm396_vm0, %v1466_v8  ;;  %1304 = vmatprep.subr.bf16.mxu1 %v1473_v11 }
  0xb0   : > { %1292 = vmatprep.mubr.msk.bf16.mxu0 %vm396_vm0, %v1467_v9  ;;  %860 = vmatpush1.bf16.msra.mxu0 %v1485_v24 }
  0xb1   : > { %861 = vmatprep.subr.bf16.mxu0 %v1490_v26 }
  0xb2   : > { %1305 = vmatpush3.bf16.msra.mxu1 %v1473_v11 }
  0xb3   : > { %1306 = vmatprep.subr.bf16.mxu1 %v1474_v13 }
  0xb4   : > { %862 = vmatpush1.bf16.msra.mxu0 %v1488_v27 }
  0xb5   : > { %863 = vmatprep.subr.bf16.mxu0 %v1493_v28 }
  0xb6   : > { %1307 = vmatpush3.bf16.msra.mxu1 %v1474_v13 }
  0xb7   : > { %1293 = vmatmul.mubr.msk.bf16.gmra.mrb[4].mxu0 %vm396_vm0, %v1468_v12  ;;  %1308 = vmatprep.subr.bf16.mxu1 %v1475_v14 }
  0xb8   : > { %864 = vmatpush1.bf16.msra.mxu0 %v1491_v29  ;;  %891 = vmatprep.mubr.bf16.mxu0 %v1736_v52 }
  0xb9   : > { %865 = vmatprep.subr.bf16.mxu0 %v1496_v30 }
  0xba   : > { %1309 = vmatpush3.bf16.msra.mxu1 %v1475_v14 }
  0xbb   : > { %1310 = vmatprep.subr.bf16.mxu1 %v1476_v15 }
  0xbc   : > { %866 = vmatpush1.bf16.msra.mxu0 %v1494_v31 }
  0xbd   : > { %867 = vmatprep.subr.bf16.mxu0 %v1499_v32 }
  0xbe   : > { %1311 = vmatpush3.bf16.msra.mxu1 %v1476_v15 }
  0xbf   : > { %1320 = vmatprep.subr.bf16.mxu1 %v1477_v16 }
  0xc0   : > { %868 = vmatpush1.bf16.msra.mxu0 %v1497_v33 }
  0xc1   : > { %1313 = vmatmul.mubr.bf16.vlgmr.msra.gmra.mrb[0].mxu1 %v1462_v1  ;;  %869 = vmatprep.subr.bf16.mxu0 %v1502_v34 }
  0xc2   : > { %1321 = vmatpush3.bf16.msra.mxu1 %v1477_v16  ;;  %1316 = vmatprep.mubr.bf16.mxu1 %v1463_v2 }
  0xc3   : > { %1322 = vmatprep.subr.bf16.mxu1 %v1478_v17 }
  0xc4   : > { %870 = vmatpush1.bf16.msra.mxu0 %v1500_v35 }
  0xc5   : > { %871 = vmatprep.subr.bf16.mxu0 %v1505_v48 }
  0xc6   : > { %1323 = vmatpush3.bf16.msra.mxu1 %v1478_v17 }
  0xc7   : > { %1324 = vmatprep.subr.bf16.mxu1 %v1479_v18 }
  0xc8   : > { %872 = vmatpush1.bf16.msra.mxu0 %v1503_v49 }
  0xc9   : > { %1317 = vmatmul.mubr.bf16.gmra.mrb[4].mxu1 %v1464_v4  ;;  %873 = vmatprep.subr.bf16.mxu0 %v1508_v50 }
  0xca   : > { %1325 = vmatpush3.bf16.msra.mxu1 %v1479_v18  ;;  %v1229_v18 = vld [vmem:[%s2061_s6] ss:$0 sm:$0xff] }
  0xcb   : > { %1326 = vmatprep.subr.bf16.mxu1 %v1480_v19 }
  0xcc   : > { %874 = vmatpush1.bf16.msra.mxu0 %v1506_v51 }
  0xce   : > { %1327 = vmatpush3.bf16.msra.mxu1 %v1480_v19 }
  0xcf   : > { %1328 = vmatprep.subr.bf16.mxu1 %v1481_v20 }
  0xd2   : > { %1329 = vmatpush3.bf16.msra.mxu1 %v1481_v20 }
  0xd3   : > { %1330 = vmatprep.subr.bf16.mxu1 %v1482_v21 }
  0xd6   : > { %1331 = vmatpush3.bf16.msra.mxu1 %v1482_v21 }
  0xd7   : > { %1332 = vmatprep.subr.bf16.mxu1 %v1483_v22 }
  0xda   : > { %1333 = vmatpush3.bf16.msra.mxu1 %v1483_v22 }
  0xdb   : > { %1334 = vmatprep.subr.bf16.mxu1 %v1484_v23 }
  0xde   : > { %1335 = vmatpush3.bf16.msra.mxu1 %v1484_v23 }
 0x182   : > { %v1290_v36 = vpop.f32.mrb[0].mxu0 }
 0x183   : > { %v443_v37 = vpop.f32.mrb[1].mxu0 }
 0x184   : > { %v1291_v38 = vpop.f32.mrb[2].mxu0 }
 0x185   : > { %v475_v39 = vpack.c.bf16 %v1291_v38, %v1290_v36  ;;  %v446_v40 = vpop.f32.mrb[3].mxu0 }
 0x186   : > { %v474_v41 = vpack.c.bf16 %v446_v40, %v443_v37 }
 0x188   : > { %1336 = vmatprep.mubr.bf16.mxu1 %v474_v41 }
 0x189   : > { %1337 = vmatmul.mubr.bf16.vlgmr.msra.gmra.mrb[0].mxu1 %v475_v39 }
 0x18a   : > { %v1294_v42 = vpop.f32.mrb[4].mxu0 }
 0x18b   : > { %v459_v43 = vpop.f32.mrb[5].mxu0 }
 0x18c   : > { %v1295_v44 = vpop.f32.mrb[6].mxu0 }
 0x18d   : > { %v477_v45 = vpack.c.bf16 %v1295_v44, %v1294_v42  ;;  %v462_v46 = vpop.f32.mrb[7].mxu0 }
 0x18e   : > { %v476_v47 = vpack.c.bf16 %v462_v46, %v459_v43 }
 0x190   : > { %1340 = vmatprep.mubr.bf16.mxu1 %v476_v47 }
 0x191   : > { %1341 = vmatmul.mubr.bf16.gmra.mrb[4].mxu1 %v477_v45 }
 0x25c   : > { %v1338_v54 = vpop.f32.mrb[0].mxu1 }
 0x25d   : > { %v745_v55 = vadd.f32 %v1338_v54, %v1212_v53  ;;  %v705_v56 = vpop.f32.mrb[1].mxu1 }
 0x25e   : > { %v743_v57 = vadd.f32 %v1212_v53, %v705_v56  ;;  %v1339_v58 = vpop.f32.mrb[2].mxu1 }
 0x25f   : > { %v746_v59 = vadd.f32 %v1339_v58, %v1212_v53  ;;  %v708_v60 = vpop.f32.mrb[3].mxu1  ;;  %v753_v62 = vmax.f32 %v745_v55, 0.0 }
 0x260   : > { %v744_v61 = vadd.f32 %v1212_v53, %v708_v60  ;;  %v751_v0 = vmax.f32 %v743_v57, 0.0 }
 0x261   : > { %v754_v63 = vmax.f32 %v746_v59, 0.0 }
 0x262   : > { %v752_v1 = vmax.f32 %v744_v61, 0.0 }
 0x263   : > { %v760_v2 = vpack.c.bf16 %v754_v63, %v753_v62 }
 0x264   : > { %v759_v3 = vpack.c.bf16 %v752_v1, %v751_v0  ;;  %v1342_v4 = vpop.f32.mrb[4].mxu1 }
 0x265   : > { %v749_v5 = vadd.f32 %v1342_v4, %v1212_v53  ;;  %v721_v6 = vpop.f32.mrb[5].mxu1 }
 0x266   : > { %v747_v7 = vadd.f32 %v1212_v53, %v721_v6  ;;  %v1343_v8 = vpop.f32.mrb[6].mxu1  ;;  %892 = vmatmul.mubr.bf16.vlgmr.msra.gmra.mrb[8].mxu0 %v759_v3 }
 0x267   : > { %v750_v9 = vadd.f32 %v1343_v8, %v1212_v53  ;;  %v724_v10 = vpop.f32.mrb[7].mxu1  ;;  %901 = vmatprep.mubr.bf16.mxu0 %v1736_v52  ;;  %v757_v12 = vmax.f32 %v749_v5, 0.0 }
 0x268   : > { %v748_v11 = vadd.f32 %v1212_v53, %v724_v10  ;;  %v755_v14 = vmax.f32 %v747_v7, 0.0 }
 0x269   : > { %v758_v13 = vmax.f32 %v750_v9, 0.0 }
 0x26a   : > { %v756_v15 = vmax.f32 %v748_v11, 0.0 }
 0x26b   : > { %v762_v16 = vpack.c.bf16 %v758_v13, %v757_v12 }
 0x26c   : > { %v761_v17 = vpack.c.bf16 %v756_v15, %v755_v14 }
 0x26e   : > { %902 = vmatmul.mubr.bf16.gmra.mrb[12].mxu0 %v760_v2 }
 0x26f   : > { %911 = vmatprep.mubr.bf16.mxu0 %v1736_v52 }
 0x276   : > { %912 = vmatmul.mubr.bf16.gmra.mrb[16].mxu0 %v761_v17 }
 0x277   : > { %921 = vmatprep.mubr.bf16.mxu0 %v1736_v52 }
 0x27e   : > { %922 = vmatmul.mubr.bf16.gmra.mrb[20].mxu0 %v762_v16 }
 0x339   : > { %v893_v19 = vpop.f32.mrb[8].mxu0 }
 0x33a   : > { %v895_v20 = vpop.f32.mrb[9].mxu0 }
 0x33b   : > { %v947_v21 = vadd.f32 %v1229_v18, %v895_v20  ;;  %v897_v22 = vpop.f32.mrb[10].mxu0 }
 0x33c   : > { %v932_v23 = vpack.c.bf16 %v897_v22, %v893_v19  ;;  %v899_v24 = vpop.f32.mrb[11].mxu0 }
 0x33d   : > { %955 = vst [vmem:[#allocation3] sm:$0xff] %v947_v21  ;;  %v948_v25 = vadd.f32 %v1229_v18, %v899_v24 }
 0x33e   : > { %936 = vst [vmem:[#allocation2] sm:$0xff] %v932_v23 }
 0x33f   : > { %956 = vst [vmem:[#allocation3 + $0x8] sm:$0xff] %v948_v25 }
 0x341   : > { %v903_v26 = vpop.f32.mrb[12].mxu0 }
 0x342   : > { %v905_v27 = vpop.f32.mrb[13].mxu0 }
 0x343   : > { %v949_v28 = vadd.f32 %v1229_v18, %v905_v27  ;;  %v907_v29 = vpop.f32.mrb[14].mxu0 }
 0x344   : > { %v933_v30 = vpack.c.bf16 %v907_v29, %v903_v26  ;;  %v909_v31 = vpop.f32.mrb[15].mxu0 }
 0x345   : > { %957 = vst [vmem:[#allocation3 + $0x10] sm:$0xff] %v949_v28  ;;  %v950_v32 = vadd.f32 %v1229_v18, %v909_v31 }
 0x346   : > { %937 = vst [vmem:[#allocation2 + $0x8] sm:$0xff] %v933_v30 }
 0x347   : > { %958 = vst [vmem:[#allocation3 + $0x18] sm:$0xff] %v950_v32 }
 0x349   : > { %v913_v33 = vpop.f32.mrb[16].mxu0 }
 0x34a   : > { %v915_v34 = vpop.f32.mrb[17].mxu0 }
 0x34b   : > { %v951_v35 = vadd.f32 %v1229_v18, %v915_v34  ;;  %v917_v36 = vpop.f32.mrb[18].mxu0 }
 0x34c   : > { %v934_v37 = vpack.c.bf16 %v917_v36, %v913_v33  ;;  %v919_v38 = vpop.f32.mrb[19].mxu0 }
 0x34d   : > { %959 = vst [vmem:[#allocation3 + $0x20] sm:$0xff] %v951_v35  ;;  %v952_v39 = vadd.f32 %v1229_v18, %v919_v38 }
 0x34e   : > { %938 = vst [vmem:[#allocation2 + $0x10] sm:$0xff] %v934_v37 }
 0x34f   : > { %960 = vst [vmem:[#allocation3 + $0x28] sm:$0xff] %v952_v39 }
 0x351   : > { %v923_v40 = vpop.f32.mrb[20].mxu0 }
 0x352   : > { %v925_v41 = vpop.f32.mrb[21].mxu0 }
 0x353   : > { %v953_v42 = vadd.f32 %v1229_v18, %v925_v41  ;;  %v927_v43 = vpop.f32.mrb[22].mxu0 }
 0x354   : > { %v935_v44 = vpack.c.bf16 %v927_v43, %v923_v40  ;;  %v929_v45 = vpop.f32.mrb[23].mxu0 }
 0x355   : > { %961 = vst [vmem:[#allocation3 + $0x30] sm:$0xff] %v953_v42  ;;  %v954_v46 = vadd.f32 %v1229_v18, %v929_v45 }
 0x356   : > { %939 = vst [vmem:[#allocation2 + $0x18] sm:$0xff] %v935_v44 }
 0x357   : > { %962 = vst [vmem:[#allocation3 + $0x38] sm:$0xff] %v954_v46 }
 0x358 PF: > { %v972_v47 = vld [vmem:[#allocation2] sm:$0xff]  ;;  %v973_v48 = vld [vmem:[#allocation2 + $0x8] sm:$0xff]  ;;  %s1230_s23 = sshll.u32 %s1801_s28, 5  ;;  %v974_v49 = vld [vmem:[#allocation2 + $0x10] sm:$0xff]  ;;  %vm991_vm1 = vcmask 523264   ;;  %s1241_s15 = sshll.u32 %s1801_s28, 9 }
 0x359   : > { %1344 = vmatprep.subr.bf16.mxu0 %v972_v47  ;;  %s964_s8 = sshra.s32 %s1230_s23, 3  ;;  %s976_s19 = scalar_lea.vmem [#allocation3], %s1230_s23 }
 0x35a   : > { %1345 = vmatpush3.bf16.msra.mxu0 %v972_v47  ;;  %s1231_s14 = sshll.u32 %s964_s8, 2  ;;  %s1065_s18 = sshll.u32 %s1984_s9, 4  ;;  %s2007_s18 = int_to_ptr.vmem [resolvable:$true] %s1065_s18 }
 0x35b   : > { %1346 = vmatprep.subr.bf16.mxu0 %v973_v48  ;;  %s967_s17 = scalar_lea.vmem [#allocation4], %s1231_s14  ;;  %s2005_s10 = scalar_lea.hbm %s2062_s7, %s1241_s15 }
 0x35c   : > { %v1509_v50 = vld [vmem:[%s967_s17] sm:$0xff]   ;;  %v1510_v52 = vld [vmem:[%s967_s17 + $0x8] sm:$0xff]   ;;  %s2014_s28 = scalar_lea.sflag [#allocation6], %s327_s13  ;;  %s1651_s20 = scalar_lea.vmem %s2007_s18, 512 }
 0x35d   : > { %1352 = vmatprep.mubr.msk.bf16.mxu0 %vm991_vm1, %v1509_v50  ;;  %v975_v51 = vld [vmem:[#allocation2 + $0x18] sm:$0xff]  ;;  %p1652_p8 = scmp.ne.s32.totalorder %s2007_s18, %s1651_s20  ;;  %p2087_p12 = scmp.ne.s32.totalorder %s2073_s11, 0 }
 0x35e   : > { %1347 = vmatpush3.bf16.msra.mxu0 %v973_v48  ;;  %v979_v53 = vld [vmem:[%s976_s19 + $0x10] sm:$0xff]  ;;  %v977_v54 = vld [vmem:[%s976_s19] sm:$0xff]  ;;  %v980_v56 = vld [vmem:[%s976_s19 + $0x18] sm:$0xff]  ;;  %s1737_s16 = smov [#allocation13]  }
 0x35f   : > { %1348 = vmatprep.subr.bf16.mxu0 %v974_v49  ;;  %v978_v59 = vld [vmem:[%s976_s19 + $0x8] sm:$0xff]  ;;  %p1653_p0 = pnand %p1652_p8, %p2087_p12  ;;  %s1655_s29 = sshll.u32 %s1737_s16, 4  ;;  %s1656_s29 = int_to_ptr.vmem [resolvable:$false] %s1655_s29 }
 0x360   : > { %s1657_s1 = scalar_lea.vmem %s1656_s29, 1024  ;;  %p1658_p6 = scmp.lt.s32.totalorder %s2007_s18, %s1656_s29 }
 0x361   : > { %p1654_p2 = pneg %p1653_p0  ;;  %p1659_p9 = scmp.lt.s32.totalorder %s1657_s1, %s1651_s20 }
 0x362   : > { %1349 = vmatpush3.bf16.msra.mxu0 %v974_v49 }
 0x363   : > { %1350 = vmatprep.subr.bf16.mxu0 %v975_v51  ;;  %p1660_p5 = por %p1659_p9, %p1658_p6 }
 0x365   : > { %p1661_p11 = pnand %p1660_p5, %p1654_p2 }
 0x366   : > { %1351 = vmatpush3.bf16.msra.mxu0 %v975_v51 }
 0x369   : > { %1353 = vmatmul.mubr.msk.bf16.vlgmr.msra.gmra.mrb[0].mxu0 %vm991_vm1, %v1510_v52 }
 0x43c   : > { %v1354_v55 = vpop.f32.mrb[0].mxu0 }
 0x43d   : > { %v1041_v57 = vadd.f32 %v1354_v55, %v979_v53  ;;  %v1032_v58 = vpop.f32.mrb[1].mxu0 }
 0x43e   : > { %v1033_v60 = vadd.f32 %v1032_v58, %v977_v54  ;;  %v1355_v61 = vpop.f32.mrb[2].mxu0 }
 0x43f   : > { %1049 = vst [vmem:[%s1984_s9 + $0x10] sm:$0xff] %v1041_v57  ;;  %v1044_v62 = vadd.f32 %v1355_v61, %v980_v56  ;;  %v1035_v63 = vpop.f32.mrb[3].mxu0 }
 0x440   : > { %1047 = vst [vmem:[%s1984_s9] sm:$0xff] %v1033_v60  ;;  %v1036_v0 = vadd.f32 %v1035_v63, %v978_v59 }
 0x441   : > { %1050 = vst [vmem:[%s1984_s9 + $0x18] sm:$0xff] %v1044_v62 }
 0x442   : > { %1048 = vst [vmem:[%s1984_s9 + $0x8] sm:$0xff] %v1036_v0 }
 0x443   : > { %1664 = shalt.err (!%p1661_p11)
}
 0x444   : > { %s1665_s13 = scalar_lea.hbm %s2005_s10, 512  ;;  %s1669_s30 = scalar_lea.hbm %s2062_s7, 1024 }
 0x445   : > { %p1666_p1 = scmp.ne.s32.totalorder %s2005_s10, %s1665_s13  ;;  %p1670_p4 = scmp.lt.u32.totalorder %s2005_s10, %s2062_s7 }
 0x446   : > { %p1671_p13 = scmp.lt.u32.totalorder %s1669_s30, %s1665_s13  ;;  %p1673_p8 = scmp.lt.u32.totalorder %s1665_s13, %s2005_s10 }
 0x447   : > { %p1667_p10 = pnand %p1666_p1, %p2087_p12 }
 0x448   : > { %p1672_p7 = por %p1671_p13, %p1670_p4 }
 0x449   : > { %p1668_p3 = pneg %p1667_p10 }
 0x44a   : > { %p1674_p0 = por %p1673_p8, %p1672_p7 }
 0x44c   : > { %p1675_p2 = pnand %p1674_p0, %p1668_p3 }
 0x44e   : > { %1678 = shalt.err (!%p1675_p2)
}
 0x44f   : > { %s1738_s14 = smov 128   ;;  %s1739_s17 = smov 8  }
 0x450   : > { %1384 = dma.vmem_to_hbm [thread:$0]  (%p2087_p12), %s2007_s18, 512, %s2005_s10, %s2014_s28, %s1738_s14, %s1738_s14, %s1739_s17  }
 0x451 PF: > { %p1416_p6 = scmp.ge.s32.totalorder %s1725_s27, 2  ;;  %s1080_s19 = sand.u32 1, %s1713_s24  }
 0x452   : > { %p2088_p9 = scmp.ne.s32.totalorder %s2074_s12, 0  ;;  %s1081_s15 = scalar_lea.sflag [#allocation6], %s1080_s19 }
 0x454   : > { %p1403_p5 = pnand %p1416_p6, %p2088_p9 }
 0x456   : > { %1708 = dma.done.wait (!%p1403_p5), %s1081_s15, 512  }
 0x457   : > { %1710 = vsyncadd (!%p1403_p5), %s1081_s15, 4294966784  ;;  %s2089_s27 = sld [smem:[#allocation19_spill]]  ;;  %s2090_s21 = sld [smem:[#allocation18_spill]] }
 0x458   : > { %s2091_s26 = sld [smem:[#allocation20_spill]]  ;;  %s2092_s24 = smov %s1717_s25 }
 0x45d   : > { %p20_p11 = scmp.ge.s32.totalorder %s2089_s27, 4   ;;  %s2093_s25 = smov %s2090_s21 }
 0x45f   :  { %22 = sbr.rel (!%p20_p11) target bundleno = 8 (0x8), region = 107 }
 0x466   :  { %1086 = vsyncpa [#allocation5], 1 }
 0x467   :  { %1088 = vsyncpa [#allocation5 + $0x1], 1 }
 0x468   :  { %1089 = vsyncpa [#allocation8], 1 }
 0x469   :  { %1090 = vsyncpa [#allocation11], 1 }
 0x46a   :  { %1091 = vsyncpa [#allocation6], 1 }
 0x46b   :  { %1093 = vsyncpa [#allocation6 + $0x1], 1 }

</bundles_post_ra>
